<compile_context>
chip_gen: v7x
topology: tpu7x:2x2x1
jax: 0.10.0
libtpu: 0.0.40
codegen_flags: <defaults>
</compile_context>

<pallas_src>
import functools

import jax
import jax.numpy as jnp
import numpy as np
from jax.experimental import pallas as pl
from jax.experimental.pallas import tpu as pltpu


def _round_up(a, m):
    return (a + m - 1) // m * m


# ----------------------------- Pallas kernel --------------------------------
def gcn_cf_kernel(phat_ref, adj_ref, x_ref, w_ref, bias_ref, out_ref, *,
                  nfeat, nhid, nout, nclass, use_bf16):
    f32 = jnp.float32

    # Packed weights: row-stacked [W1; W2; W3; Wlin], rows padded to multiples
    # of 8 (sublane-aligned static slices), lanes padded to a common width.
    o1 = 0
    o2 = o1 + _round_up(nfeat, 8)
    o3 = o2 + _round_up(nhid, 8)
    o4 = o3 + _round_up(nhid, 8)
    w1 = w_ref[o1:o1 + nfeat, 0:nhid]
    w2 = w_ref[o2:o2 + nhid, 0:nhid]
    w3 = w_ref[o3:o3 + nhid, 0:nout]
    wlin = w_ref[o4:o4 + 2 * nhid + nout, 0:nclass]

    # Packed biases: one bias per sublane row; every slice starts at lane 0.
    b1 = bias_ref[0:1, 0:nhid]
    b2 = bias_ref[1:2, 0:nhid]
    b3 = bias_ref[2:3, 0:nout]
    blin = bias_ref[3:4, 0:nclass]

    # prod = sigmoid(P_hat_symm) * sub_adj ; "+ I" folded analytically:
    #   A_tilde = prod + I,   deg = rowsum(prod) + 1,   A_tilde @ H = prod @ H + H
    prod = jax.nn.sigmoid(phat_ref[...]) * adj_ref[...]
    deg = jnp.sum(prod, axis=1, keepdims=True) + f32(1.0)
    # sub_adj is a nonnegative 0/1 adjacency and sigmoid >= 0, so deg >= 1:
    # torch's isinf->0 guard is dead code here; bare rsqrt keeps it on the EUP.
    d = jax.lax.rsqrt(deg)

    # Propagation with the diag scaling folded in (norm_adj never built):
    #   norm_adj @ H == d * (A_tilde @ (d*H)) == d * (prod @ (d*H) + d*H)
    if use_bf16:
        # Large-N path only: bf16 MXU operands, f32 accumulation.
        prod_mx = prod.astype(jnp.bfloat16)

        def prop(h):
            hs = d * h
            return d * (jnp.dot(prod_mx, hs.astype(jnp.bfloat16),
                                preferred_element_type=f32) + hs)
    else:
        # N fits in one MXU tile: plain f32 (casts would be pure VPU overhead).
        def prop(h):
            hs = d * h
            return d * (jnp.dot(prod, hs, preferred_element_type=f32) + hs)

    x = x_ref[...]

    # gc1: relu(norm_adj @ (x @ W1) + b1)
    x1 = jnp.maximum(
        prop(jnp.dot(x, w1, preferred_element_type=f32)) + b1, f32(0.0))
    # TODO(synk): F.dropout in training mode not implemented (eval => identity).

    # gc2: relu(norm_adj @ (x1 @ W2) + b2)
    x2 = jnp.maximum(
        prop(jnp.dot(x1, w2, preferred_element_type=f32)) + b2, f32(0.0))

    # gc3: norm_adj @ (x2 @ W3) + b3   (no relu)
    x3 = prop(jnp.dot(x2, w3, preferred_element_type=f32)) + b3

    # lin(concat(x1, x2, x3)): single lane-axis concat (2*nhid+nout <= 128
    # lanes at these sizes) and one MXU matmul against the un-split Wlin.
    h_cat = jnp.concatenate([x1, x2, x3], axis=1)
    logits = jnp.dot(h_cat, wlin, preferred_element_type=f32) + blin

    # log_softmax over classes (axis=1)
    m = jnp.max(logits, axis=1, keepdims=True)
    shifted = logits - m
    lse = jnp.log(jnp.sum(jnp.exp(shifted), axis=1, keepdims=True))
    out_ref[...] = shifted - lse


# ------------------------------- JAX glue ------------------------------------
def create_symm_matrix_from_vec(vec, n):
    """CF-GNNExplainer helper, vectorized (gather, no scatter):
    M[i, j] = vec[k] with k = hi*(hi+1)//2 + lo, hi=max(i,j), lo=min(i,j)."""
    idx = jnp.arange(n)
    hi = jnp.maximum(idx[:, None], idx[None, :])
    lo = jnp.minimum(idx[:, None], idx[None, :])
    return jnp.take(vec, hi * (hi + 1) // 2 + lo)


@jax.jit
def gcn_synthetic_perturb_forward(x, sub_adj, p_vec, params):
    n = sub_adj.shape[0]
    phat = create_symm_matrix_from_vec(p_vec, n)

    w1, b1, w2, b2, w3, b3, wlin, blin = params
    nfeat = w1.shape[0]
    nhid = w1.shape[1]
    nout = w3.shape[1]
    nclass = wlin.shape[1]

    # Pack the four weights row-wise (rows padded to sublane multiples of 8,
    # lanes padded to a common width): four tiny DMAs -> one.
    wwidth = max(nhid, nout, nclass)

    def pad_w(w):
        return jnp.pad(w, ((0, _round_up(w.shape[0], 8) - w.shape[0]),
                           (0, wwidth - w.shape[1])))

    w_pack = jnp.concatenate([pad_w(w1), pad_w(w2), pad_w(w3), pad_w(wlin)],
                             axis=0)

    # Pack the four biases one-per-sublane-row (lane offset 0 slices in-kernel).
    def pad_b(b):
        return jnp.pad(b, (0, wwidth - b.shape[0]))

    bias_pack = jnp.stack([pad_b(b1), pad_b(b2), pad_b(b3), pad_b(blin)], axis=0)

    # bf16 propagation operands only pay off once N exceeds one MXU tile; at
    # small N they are pure cast overhead + precision loss.
    use_bf16 = n > 128

    vmem = pl.BlockSpec(memory_space=pltpu.MemorySpace.VMEM)
    kernel = functools.partial(gcn_cf_kernel, nfeat=nfeat, nhid=nhid,
                               nout=nout, nclass=nclass, use_bf16=use_bf16)
    return pl.pallas_call(
        kernel,
        out_shape=jax.ShapeDtypeStruct((n, nclass), jnp.float32),
        in_specs=[vmem] * 5,
        out_specs=vmem,
        compiler_params=pltpu.CompilerParams(
            vmem_limit_bytes=32 * 1024 * 1024),
    )(phat, sub_adj, x, w_pack, bias_pack)


# ----------------------------- references ------------------------------------
def reference_forward_f32(x, sub_adj, p_vec, params):
    """Faithful pure-JAX transliteration of the torch module (f32, HIGHEST)."""
    n = sub_adj.shape[0]
    phat = create_symm_matrix_from_vec(p_vec, n)
    w1, b1, w2, b2, w3, b3, wlin, blin = params
    dot = functools.partial(jnp.dot, precision=jax.lax.Precision.HIGHEST)
    a_tilde = jax.nn.sigmoid(phat) * sub_adj + jnp.eye(n, dtype=jnp.float32)
    deg = jnp.sum(a_tilde, axis=1)
    d = jnp.power(deg, -0.5)
    d = jnp.where(jnp.isinf(d), 0.0, d)
    norm_adj = d[:, None] * a_tilde * d[None, :]
    x1 = jax.nn.relu(dot(norm_adj, dot(x, w1)) + b1)
    x2 = jax.nn.relu(dot(norm_adj, dot(x1, w2)) + b2)
    x3 = dot(norm_adj, dot(x2, w3)) + b3
    logits = dot(jnp.concatenate([x1, x2, x3], axis=1), wlin) + blin
    return jax.nn.log_softmax(logits, axis=1)


def reference_forward_matched(x, sub_adj, p_vec, params):
    """Pure-JAX mirror of the kernel's exact (small-N, f32) math: folded +I,
    rsqrt degree scaling, default-precision dots."""
    n = sub_adj.shape[0]
    phat = create_symm_matrix_from_vec(p_vec, n)
    w1, b1, w2, b2, w3, b3, wlin, blin = params
    dot = functools.partial(jnp.dot, preferred_element_type=jnp.float32)
    prod = jax.nn.sigmoid(phat) * sub_adj
    deg = jnp.sum(prod, axis=1, keepdims=True) + 1.0
    d = jax.lax.rsqrt(deg)

    def prop(h):
        hs = d * h
        return d * (dot(prod, hs) + hs)

    x1 = jax.nn.relu(prop(dot(x, w1)) + b1)
    x2 = jax.nn.relu(prop(dot(x1, w2)) + b2)
    x3 = prop(dot(x2, w3)) + b3
    logits = dot(jnp.concatenate([x1, x2, x3], axis=1), wlin) + blin
    return jax.nn.log_softmax(logits, axis=1)


# --------------------------------- main ---------------------------------------
if __name__ == "__main__":
    # Small shapes consistent with the module.
    num_nodes, nfeat, nhid, nout, nclass = 16, 16, 32, 16, 8
    p_vec_size = (num_nodes * num_nodes - num_nodes) // 2 + num_nodes  # tril incl. diag

    key = jax.random.PRNGKey(0)
    kx, kadj, k1, k2, k3, klin = jax.random.split(key, 6)

    # Node features.
    x = jax.random.normal(kx, (num_nodes, nfeat), dtype=jnp.float32)

    # Symmetric 0/1 adjacency with zero diagonal (sub_adj).
    upper = (jax.random.uniform(kadj, (num_nodes, num_nodes)) < 0.3).astype(jnp.float32)
    sub_adj = jnp.triu(upper, 1)
    sub_adj = sub_adj + sub_adj.T

    # P_vec initialized to ones (edge_additions=False branch of __init__).
    p_vec = jnp.ones((p_vec_size,), dtype=jnp.float32)

    # Deterministic synthetic parameters (shapes from the module's __init__).
    def glorot(k, shape):
        fan_in = shape[0]
        return (jax.random.normal(k, shape, dtype=jnp.float32)
                / jnp.sqrt(jnp.float32(fan_in)))

    w1 = glorot(k1, (nfeat, nhid));            b1 = jnp.full((nhid,), 0.01, jnp.float32)
    w2 = glorot(k2, (nhid, nhid));             b2 = jnp.full((nhid,), 0.02, jnp.float32)
    w3 = glorot(k3, (nhid, nout));             b3 = jnp.full((nout,), 0.03, jnp.float32)
    wlin = glorot(klin, (nhid + nhid + nout, nclass))
    blin = jnp.full((nclass,), 0.05, jnp.float32)
    params = (w1, b1, w2, b2, w3, b3, wlin, blin)

    out = gcn_synthetic_perturb_forward(x, sub_adj, p_vec, params)
    out = jax.block_until_ready(out)
    assert out.shape == (num_nodes, nclass)

    # Tight-ish check against the matched-math (f32, default precision) mirror.
    ref_m = jax.block_until_ready(reference_forward_matched(x, sub_adj, p_vec, params))
    assert np.allclose(np.asarray(out), np.asarray(ref_m), atol=2e-2, rtol=2e-2)

    # Check against the faithful f32 HIGHEST-precision module reference.
    ref_f = jax.block_until_ready(reference_forward_f32(x, sub_adj, p_vec, params))
    assert np.allclose(np.asarray(out), np.asarray(ref_f), atol=5e-2, rtol=5e-2)

    print("KERNEL_OK")
</pallas_src>

<mosaic_0001>
module attributes {stable_mosaic.version = 11 : i64} {
  func.func @gcn_cf_kernel(%arg0: memref<16x16xf32, #tpu.memory_space<vmem>>, %arg1: memref<16x16xf32, #tpu.memory_space<vmem>>, %arg2: memref<16x16xf32, #tpu.memory_space<vmem>>, %arg3: memref<160x32xf32, #tpu.memory_space<vmem>>, %arg4: memref<4x32xf32, #tpu.memory_space<vmem>>, %arg5: memref<16x8xf32, #tpu.memory_space<vmem>>) attributes {dimension_semantics = [], scalar_prefetch = 0 : i64, scratch_operands = 0 : i64, tpu.core_type = #tpu.core_type<tc>} {
    %c0 = arith.constant 0 : index
    %c0_0 = arith.constant 0 : index
    %0 = vector.load %arg3[%c0, %c0_0] : memref<160x32xf32, #tpu.memory_space<vmem>>, vector<16x32xf32>
    %c16 = arith.constant 16 : index
    %c0_1 = arith.constant 0 : index
    %1 = vector.load %arg3[%c16, %c0_1] : memref<160x32xf32, #tpu.memory_space<vmem>>, vector<32x32xf32>
    %c48 = arith.constant 48 : index
    %c0_2 = arith.constant 0 : index
    %2 = vector.load %arg3[%c48, %c0_2] : memref<160x32xf32, #tpu.memory_space<vmem>>, vector<32x16xf32>
    %c80 = arith.constant 80 : index
    %c0_3 = arith.constant 0 : index
    %3 = vector.load %arg3[%c80, %c0_3] : memref<160x32xf32, #tpu.memory_space<vmem>>, vector<80x8xf32>
    %c0_4 = arith.constant 0 : index
    %c0_5 = arith.constant 0 : index
    %4 = vector.load %arg4[%c0_4, %c0_5] : memref<4x32xf32, #tpu.memory_space<vmem>>, vector<1x32xf32>
    %c1 = arith.constant 1 : index
    %c0_6 = arith.constant 0 : index
    %5 = vector.load %arg4[%c1, %c0_6] : memref<4x32xf32, #tpu.memory_space<vmem>>, vector<1x32xf32>
    %c2 = arith.constant 2 : index
    %c0_7 = arith.constant 0 : index
    %6 = vector.load %arg4[%c2, %c0_7] : memref<4x32xf32, #tpu.memory_space<vmem>>, vector<1x16xf32>
    %c3 = arith.constant 3 : index
    %c0_8 = arith.constant 0 : index
    %7 = vector.load %arg4[%c3, %c0_8] : memref<4x32xf32, #tpu.memory_space<vmem>>, vector<1x8xf32>
    %c0_9 = arith.constant 0 : index
    %c0_10 = arith.constant 0 : index
    %8 = vector.load %arg0[%c0_9, %c0_10] : memref<16x16xf32, #tpu.memory_space<vmem>>, vector<16x16xf32>
    %9 = arith.negf %8 : vector<16x16xf32>
    %10 = math.exp %9 : vector<16x16xf32>
    %cst = arith.constant 1.000000e+00 : f32
    %11 = vector.broadcast %cst : f32 to vector<16x16xf32>
    %12 = arith.addf %11, %10 : vector<16x16xf32>
    %13 = arith.divf %11, %12 : vector<16x16xf32>
    %c0_11 = arith.constant 0 : index
    %c0_12 = arith.constant 0 : index
    %14 = vector.load %arg1[%c0_11, %c0_12] : memref<16x16xf32, #tpu.memory_space<vmem>>, vector<16x16xf32>
    %15 = arith.mulf %13, %14 : vector<16x16xf32>
    %cst_13 = arith.constant dense<0.000000e+00> : vector<16xf32>
    %16 = vector.multi_reduction <add>, %15, %cst_13 [1] : vector<16x16xf32> to vector<16xf32>
    %17 = vector.shape_cast %16 : vector<16xf32> to vector<16x1xf32>
    %cst_14 = arith.constant 1.000000e+00 : f32
    %18 = vector.broadcast %cst_14 : f32 to vector<16x1xf32>
    %19 = arith.addf %17, %18 : vector<16x1xf32>
    %20 = math.rsqrt %19 : vector<16x1xf32>
    %c0_15 = arith.constant 0 : index
    %c0_16 = arith.constant 0 : index
    %21 = vector.load %arg2[%c0_15, %c0_16] : memref<16x16xf32, #tpu.memory_space<vmem>>, vector<16x16xf32>
    %cst_17 = arith.constant dense<0.000000e+00> : vector<16x32xf32>
    %22 = tpu.matmul %21, %0, %cst_17 {dimension_numbers = #tpu.dot_dimension_numbers<[1], [0], [0], [1], [0, 0, 1, 1], [], []>} : vector<16x16xf32>, vector<16x32xf32>, vector<16x32xf32> -> vector<16x32xf32>
    %23 = vector.broadcast %20 : vector<16x1xf32> to vector<16x32xf32>
    %24 = arith.mulf %23, %22 : vector<16x32xf32>
    %cst_18 = arith.constant dense<0.000000e+00> : vector<16x32xf32>
    %25 = tpu.matmul %15, %24, %cst_18 {dimension_numbers = #tpu.dot_dimension_numbers<[1], [0], [0], [1], [0, 0, 1, 1], [], []>} : vector<16x16xf32>, vector<16x32xf32>, vector<16x32xf32> -> vector<16x32xf32>
    %26 = arith.addf %25, %24 : vector<16x32xf32>
    %27 = vector.broadcast %20 : vector<16x1xf32> to vector<16x32xf32>
    %28 = arith.mulf %27, %26 : vector<16x32xf32>
    %29 = vector.broadcast %4 : vector<1x32xf32> to vector<16x32xf32>
    %30 = arith.addf %28, %29 : vector<16x32xf32>
    %cst_19 = arith.constant 0.000000e+00 : f32
    %31 = vector.broadcast %cst_19 : f32 to vector<16x32xf32>
    %32 = arith.maximumf %30, %31 : vector<16x32xf32>
    %cst_20 = arith.constant dense<0.000000e+00> : vector<16x32xf32>
    %33 = tpu.matmul %32, %1, %cst_20 {dimension_numbers = #tpu.dot_dimension_numbers<[1], [0], [0], [1], [0, 0, 1, 1], [], []>} : vector<16x32xf32>, vector<32x32xf32>, vector<16x32xf32> -> vector<16x32xf32>
    %34 = vector.broadcast %20 : vector<16x1xf32> to vector<16x32xf32>
    %35 = arith.mulf %34, %33 : vector<16x32xf32>
    %cst_21 = arith.constant dense<0.000000e+00> : vector<16x32xf32>
    %36 = tpu.matmul %15, %35, %cst_21 {dimension_numbers = #tpu.dot_dimension_numbers<[1], [0], [0], [1], [0, 0, 1, 1], [], []>} : vector<16x16xf32>, vector<16x32xf32>, vector<16x32xf32> -> vector<16x32xf32>
    %37 = arith.addf %36, %35 : vector<16x32xf32>
    %38 = vector.broadcast %20 : vector<16x1xf32> to vector<16x32xf32>
    %39 = arith.mulf %38, %37 : vector<16x32xf32>
    %40 = vector.broadcast %5 : vector<1x32xf32> to vector<16x32xf32>
    %41 = arith.addf %39, %40 : vector<16x32xf32>
    %cst_22 = arith.constant 0.000000e+00 : f32
    %42 = vector.broadcast %cst_22 : f32 to vector<16x32xf32>
    %43 = arith.maximumf %41, %42 : vector<16x32xf32>
    %cst_23 = arith.constant dense<0.000000e+00> : vector<16x16xf32>
    %44 = tpu.matmul %43, %2, %cst_23 {dimension_numbers = #tpu.dot_dimension_numbers<[1], [0], [0], [1], [0, 0, 1, 1], [], []>} : vector<16x32xf32>, vector<32x16xf32>, vector<16x16xf32> -> vector<16x16xf32>
    %45 = vector.broadcast %20 : vector<16x1xf32> to vector<16x16xf32>
    %46 = arith.mulf %45, %44 : vector<16x16xf32>
    %cst_24 = arith.constant dense<0.000000e+00> : vector<16x16xf32>
    %47 = tpu.matmul %15, %46, %cst_24 {dimension_numbers = #tpu.dot_dimension_numbers<[1], [0], [0], [1], [0, 0, 1, 1], [], []>} : vector<16x16xf32>, vector<16x16xf32>, vector<16x16xf32> -> vector<16x16xf32>
    %48 = arith.addf %47, %46 : vector<16x16xf32>
    %49 = vector.broadcast %20 : vector<16x1xf32> to vector<16x16xf32>
    %50 = arith.mulf %49, %48 : vector<16x16xf32>
    %51 = vector.broadcast %6 : vector<1x16xf32> to vector<16x16xf32>
    %52 = arith.addf %50, %51 : vector<16x16xf32>
    %53 = tpu.concatenate %32, %43, %52 in 1 : vector<16x32xf32>, vector<16x32xf32>, vector<16x16xf32> -> vector<16x80xf32>
    %cst_25 = arith.constant dense<0.000000e+00> : vector<16x8xf32>
    %54 = tpu.matmul %53, %3, %cst_25 {dimension_numbers = #tpu.dot_dimension_numbers<[1], [0], [0], [1], [0, 0, 1, 1], [], []>} : vector<16x80xf32>, vector<80x8xf32>, vector<16x8xf32> -> vector<16x8xf32>
    %55 = vector.broadcast %7 : vector<1x8xf32> to vector<16x8xf32>
    %56 = arith.addf %54, %55 : vector<16x8xf32>
    %cst_26 = arith.constant dense<0xFF800000> : vector<16xf32>
    %57 = vector.multi_reduction <maximumf>, %56, %cst_26 [1] : vector<16x8xf32> to vector<16xf32>
    %58 = vector.shape_cast %57 : vector<16xf32> to vector<16x1xf32>
    %59 = vector.broadcast %58 : vector<16x1xf32> to vector<16x8xf32>
    %60 = arith.subf %56, %59 : vector<16x8xf32>
    %61 = math.exp %60 : vector<16x8xf32>
    %cst_27 = arith.constant dense<0.000000e+00> : vector<16xf32>
    %62 = vector.multi_reduction <add>, %61, %cst_27 [1] : vector<16x8xf32> to vector<16xf32>
    %63 = vector.shape_cast %62 : vector<16xf32> to vector<16x1xf32>
    %64 = math.log %63 : vector<16x1xf32>
    %65 = vector.broadcast %64 : vector<16x1xf32> to vector<16x8xf32>
    %66 = arith.subf %60, %65 : vector<16x8xf32>
    %c0_28 = arith.constant 0 : index
    %c0_29 = arith.constant 0 : index
    %67 = vector.load %arg5[%c0_28, %c0_29] : memref<16x8xf32, #tpu.memory_space<vmem>>, vector<16x8xf32>
    tpu.vector_store %arg5[%c0_28, %c0_29], %66 {strides = array<i32>} : memref<16x8xf32, #tpu.memory_space<vmem>>, vector<16x8xf32>,
    return
  }
}

</mosaic_0001>

<bundles_post_ra>
// kernel: gcn_synthetic_perturb_forward.1
= control target key start
LH: loop header
LB: loop body
LE: loop exit
PB: predicated region body
PF: predicated region fallthrough
CT: control target
= control target key end

     0   :  { %vm62_vm0 = vcmask 130048   ;;  %vm249_vm1 = vcmask 261120   ;;  %s927_s26 = smov 32   ;;  %vm600_vm2 = vcmask 523264   ;;  %vm607_vm3 = vcmask 654336   ;;  %s1113_s3 = inlined_call_operand.vmem [shape: f32[160,32], index: 3, kind: input, shape index: {}]   ;;  %s1114_s2 = inlined_call_operand.vmem [shape: f32[16,16], index: 2, kind: input, shape index: {}]   ;;  %s1115_s0 = inlined_call_operand.vmem [shape: f32[16,16], index: 0, kind: input, shape index: {}]   ;;  %s1116_s1 = inlined_call_operand.vmem [shape: f32[16,16], index: 1, kind: input, shape index: {}]   ;;  %s1117_s4 = inlined_call_operand.vmem [shape: f32[4,32], index: 4, kind: input, shape index: {}]   ;;  %s1118_s5 = inlined_call_operand.vmem [shape: f32[16,8], index: 5, kind: output, shape index: {}]  }
   0x1   :  { %v20_v0 = vld [vmem:[%s1113_s3] sm:$0xff]  ;;  %v21_v1 = vld [vmem:[%s1113_s3 + $0x8] sm:$0xff]  ;;  %v22_v32 = vld [vmem:[%s1113_s3 + $0x10] sm:$0xff]  ;;  %vm689_vm4 = vcmask 64512  }
   0x2   :  { %v73_v2 = vld [vmem:[%s1114_s2] sm:$0xff]  ;;  %v853_v3 = vpack.c.bf16 %v21_v1, %v20_v0  ;;  %v45_v6 = vld [vmem:[%s1115_s0 + $0x8] sm:$0xff]  ;;  %v23_v33 = vld [vmem:[%s1113_s3 + $0x18] sm:$0xff] }
   0x3   :  { %784 = vmatprep.mubr.msk.f32.mxu0 %vm62_vm0, %v73_v2  ;;  %v44_v4 = vld [vmem:[%s1115_s0] sm:$0xff]  ;;  %v721_v7 = vmul.f32 -1.442695, %v45_v6  ;;  %v74_v8 = vld [vmem:[%s1114_s2 + $0x8] sm:$0xff]  ;;  %v861_v34 = vpack.c.bf16 %v23_v33, %v22_v32  ;;  %v26_v54 = vld [vmem:[%s1113_s3 + $0x30] sm:$0xff] }
   0x4   :  { %v720_v5 = vmul.f32 -1.442695, %v44_v4  ;;  %854 = vmatprep.subr.bf16.mxu0 %v853_v3  ;;  %v58_v13 = vld [vmem:[%s1116_s1] sm:$0xff]  ;;  %v59_v14 = vld [vmem:[%s1116_s1 + $0x8] sm:$0xff]  ;;  %v27_v55 = vld [vmem:[%s1113_s3 + $0x38] sm:$0xff] }
   0x5   :  { %856 = vmatpush3.bf16.msra.mxu0 %v853_v3  ;;  %v24_v35 = vld [vmem:[%s1113_s3 + $0x20] sm:$0xff]  ;;  %v25_v36 = vld [vmem:[%s1113_s3 + $0x28] sm:$0xff]  ;;  %v873_v56 = vpack.c.bf16 %v27_v55, %v26_v54 }
   0x6   :  { %907 = vpow2.f32 %v720_v5  ;;  %v865_v37 = vpack.c.bf16 %v25_v36, %v24_v35  ;;  %v726_v41 = vld [vmem:[%s1117_s4] ss:$0 sm:$0xff]  ;;  %v29_v58 = vld [vmem:[%s1113_s3 + $0x48] sm:$0xff]  ;;  %v731_v0 = vld [vmem:[%s1117_s4 + $0x1] ss:$0 sm:$0xff] }
   0x7   :  { %909 = vpow2.f32 %v721_v7  ;;  %v28_v57 = vld [vmem:[%s1113_s3 + $0x40] sm:$0xff] }
   0x8   :  { %785 = vmatmul.mubr.msk.f32.vlgmr.msra.gmra.mrb[0].mxu0 %vm62_vm0, %v74_v8  ;;  %v877_v59 = vpack.c.bf16 %v29_v58, %v28_v57  ;;  %v736_v33 = vld [vmem:[%s1117_s4 + $0x2] ss:$0 sm:$0xff] }
  0x10   :  { %v908_v9 = vpop.eup %907 }
  0x11   :  { %v910_v10 = vpop.eup %909  ;;  %v52_v11 = vadd.f32 1.0, %v908_v9 }
  0x12   :  { %v53_v12 = vadd.f32 1.0, %v910_v10 }
  0x13   :  { %911 = vrcp.f32 %v52_v11 }
  0x14   :  { %913 = vrcp.f32 %v53_v12  ;;  %v30_v12 = vld [vmem:[%s1113_s3 + $0x50] sm:$0xff] }
  0x1d   :  { %v912_v15 = vpop.eup %911 }
  0x1e   :  { %v914_v16 = vpop.eup %913  ;;  %v60_v17 = vmul.f32 %v912_v15, %v58_v13  ;;  %v31_v13 = vld [vmem:[%s1113_s3 + $0x58] sm:$0xff] }
  0x1f   :  { %v985_v18 = vmul.f32 %v914_v16, %v59_v14  ;;  %v32_v14 = vld [vmem:[%s1113_s3 + $0x60] sm:$0xff]  ;;  %v885_v15 = vpack.c.bf16 %v31_v13, %v30_v12  ;;  %v33_v16 = vld [vmem:[%s1113_s3 + $0x68] sm:$0xff] }
  0x20   :  { %v63_v19 = vsel %vm62_vm0, %v60_v17, 0.0  ;;  %791 = vmatprep.mubr.msk.f32.mxu1 %vm62_vm0, %v60_v17  ;;  %827 = vmatprep.mubr.msk.f32.mxu0 %vm62_vm0, %v60_v17 }
  0x21   :  { %64 = vadd.xlane.f32.xlu0 %v63_v19  ;;  %v66_v20 = vsel %vm62_vm0, %v985_v18, 0.0  ;;  %v35_v19 = vld [vmem:[%s1113_s3 + $0x78] sm:$0xff] }
  0x25   :  { %67 = vadd.xlane.f32.xlu0 %v66_v20 }
  0xae   :  { %v65_v21 = vpop.xlane.xlu0 %64 }
  0xaf   :  { %v69_v24 = vadd.f32 1.0, %v65_v21  ;;  %v36_v21 = vld [vmem:[%s1113_s3 + $0x80] sm:$0xff] }
  0xb2   :  { %v68_v22 = vpop.xlane.xlu0 %67 }
  0xb3   :  { %v70_v23 = vadd.f32 1.0, %v68_v22  ;;  %v37_v22 = vld [vmem:[%s1113_s3 + $0x88] sm:$0xff] }
  0xb5   :  { %915 = vrsqrt.f32 %v70_v23  ;;  %v897_v23 = vpack.c.bf16 %v37_v22, %v36_v21 }
  0xb6   :  { %917 = vrsqrt.f32 %v69_v24  ;;  %v38_v24 = vld [vmem:[%s1113_s3 + $0x90] sm:$0xff] }
  0xbf   :  { %v992_v25 = vpop.eup %915 }
  0xc0   :  { %v994_v27 = vpop.eup %917 }
  0xdb   :  { %v786_v26 = vpop.f32.mrb[0].mxu0 }
  0xdc   :  { %v157_v28 = vmul.f32 %v992_v25, %v786_v26  ;;  %v147_v29 = vpop.f32.mrb[1].mxu0  ;;  %v39_v26 = vld [vmem:[%s1113_s3 + $0x98] sm:$0xff] }
  0xdd   :  { %v156_v30 = vmul.f32 %v994_v27, %v147_v29 }
  0xdf   :  { %v857_v31 = vpack.c.bf16 %v157_v28, %v156_v30 }
  0xe1   :  { %858 = vmatprep.subr.bf16.mxu1 %v857_v31 }
  0xe2   :  { %860 = vmatpush3.bf16.msra.mxu1 %v857_v31 }
  0xe3   :  { %862 = vmatprep.subr.bf16.mxu1 %v861_v34 }
  0xe5   :  { %792 = vmatmul.mubr.msk.f32.vlgmr.msra.gmra.mrb[0].mxu1 %vm62_vm0, %v985_v18 }
  0xe6   :  { %864 = vmatpush3.bf16.msra.mxu1 %v861_v34 }
  0xe7   :  { %866 = vmatprep.subr.bf16.mxu1 %v865_v37 }
  0xea   :  { %868 = vmatpush3.bf16.msra.mxu1 %v865_v37 }
 0x1b8   :  { %v793_v38 = vpop.f32.mrb[0].mxu1 }
 0x1b9   :  { %v236_v39 = vadd.f32 %v793_v38, %v157_v28  ;;  %v230_v40 = vpop.f32.mrb[1].mxu1  ;;  %v901_v28 = vpack.c.bf16 %v39_v26, %v38_v24 }
 0x1ba   :  { %v231_v42 = vadd.f32 %v230_v40, %v156_v30 }
 0x1bb   :  { %v240_v43 = vmul.f32 %v992_v25, %v236_v39 }
 0x1bc   :  { %v239_v44 = vmul.f32 %v994_v27, %v231_v42 }
 0x1bd   :  { %v1017_v45 = vadd.f32 %v726_v41, %v240_v43 }
 0x1be   :  { %v1019_v46 = vadd.f32 %v726_v41, %v239_v44  ;;  %v737_v44 = vld [vmem:[%s1117_s4 + $0x3] ss:$0 sm:$0xff] }
 0x1bf   :  { %v248_v48 = vmax.f32 %v1017_v45, 0.0 }
 0x1c0   :  { %v247_v47 = vmax.f32 %v1019_v46, 0.0 }
 0x1c2   :  { %802 = vmatprep.mubr.msk.f32.mxu1 %vm249_vm1, %v247_v47 }
 0x1c3   :  { %803 = vmatmul.mubr.msk.f32.vlgmr.msra.gmra.mrb[2].mxu1 %vm249_vm1, %v248_v48 }
 0x1c4   :  { %809 = vmatprep.mubr.msk.f32.mxu1 %vm62_vm0, %v60_v17  ;;  %v889_v17 = vpack.c.bf16 %v33_v16, %v32_v14 }
 0x296   :  { %v804_v49 = vpop.f32.mrb[2].mxu1 }
 0x297   :  { %v332_v50 = vmul.f32 %v992_v25, %v804_v49  ;;  %v322_v51 = vpop.f32.mrb[3].mxu1 }
 0x298   :  { %v331_v52 = vmul.f32 %v994_v27, %v322_v51 }
 0x29a   :  { %v869_v53 = vpack.c.bf16 %v332_v50, %v331_v52 }
 0x29c   :  { %870 = vmatprep.subr.bf16.mxu1 %v869_v53 }
 0x29d   :  { %872 = vmatpush3.bf16.msra.mxu1 %v869_v53 }
 0x29e   :  { %874 = vmatprep.subr.bf16.mxu1 %v873_v56 }
 0x2a0   :  { %810 = vmatmul.mubr.msk.f32.vlgmr.msra.gmra.mrb[4].mxu1 %vm62_vm0, %v985_v18 }
 0x2a1   :  { %876 = vmatpush3.bf16.msra.mxu1 %v873_v56 }
 0x2a2   :  { %878 = vmatprep.subr.bf16.mxu1 %v877_v59 }
 0x2a5   :  { %880 = vmatpush3.bf16.msra.mxu1 %v877_v59 }
 0x373   :  { %v811_v60 = vpop.f32.mrb[4].mxu1 }
 0x374   :  { %v405_v61 = vadd.f32 %v811_v60, %v332_v50  ;;  %v399_v62 = vpop.f32.mrb[5].mxu1 }
 0x375   :  { %v400_v63 = vadd.f32 %v399_v62, %v331_v52 }
 0x376   :  { %v409_v1 = vmul.f32 %v992_v25, %v405_v61 }
 0x377   :  { %v408_v2 = vmul.f32 %v994_v27, %v400_v63 }
 0x378   :  { %v415_v3 = vadd.f32 %v731_v0, %v409_v1 }
 0x379   :  { %v414_v4 = vadd.f32 %v731_v0, %v408_v2 }
 0x37a   :  { %v417_v5 = vmax.f32 %v415_v3, 0.0 }
 0x37b   :  { %v416_v6 = vmax.f32 %v414_v4, 0.0 }
 0x37c   :  { %586 = vrot.lane.b32.xlu1 %v417_v5, %s927_s26 }
 0x37d   :  { %820 = vmatprep.mubr.msk.f32.mxu1 %vm249_vm1, %v416_v6 }
 0x37e   :  { %821 = vmatmul.mubr.msk.f32.vlgmr.msra.gmra.mrb[6].mxu1 %vm249_vm1, %v417_v5 }
 0x380   :  { %584 = vrot.lane.b32.xlu1 %v416_v6, %s927_s26 }
 0x3ee   :  { %v587_v38 = vpop.permute.xlu1 %586 }
 0x3f2   :  { %v585_v39 = vpop.permute.xlu1 %584 }
 0x3f3   :  { %v598_v41 = vsel %vm249_vm1, %v247_v47, %v585_v39 }
 0x451   :  { %v822_v7 = vpop.f32.mrb[6].mxu1 }
 0x452   :  { %v500_v8 = vmul.f32 %v992_v25, %v822_v7  ;;  %v490_v9 = vpop.f32.mrb[7].mxu1 }
 0x453   :  { %v499_v10 = vmul.f32 %v994_v27, %v490_v9 }
 0x455   :  { %v881_v11 = vpack.c.bf16 %v500_v8, %v499_v10 }
 0x457   :  { %882 = vmatprep.subr.bf16.mxu0 %v881_v11 }
 0x458   :  { %884 = vmatpush3.bf16.msra.mxu0 %v881_v11 }
 0x459   :  { %886 = vmatprep.subr.bf16.mxu0 %v885_v15 }
 0x45b   :  { %828 = vmatmul.mubr.msk.f32.vlgmr.msra.gmra.mrb[2].mxu0 %vm62_vm0, %v985_v18  ;;  %v34_v18 = vld [vmem:[%s1113_s3 + $0x70] sm:$0xff]  ;;  %s928_s3 = smov 64  }
 0x45c   :  { %888 = vmatpush3.bf16.msra.mxu0 %v885_v15  ;;  %v893_v20 = vpack.c.bf16 %v35_v19, %v34_v18 }
 0x45d   :  { %890 = vmatprep.subr.bf16.mxu0 %v889_v17 }
 0x460   :  { %892 = vmatpush3.bf16.msra.mxu0 %v889_v17 }
 0x461   :  { %894 = vmatprep.subr.bf16.mxu0 %v893_v20 }
 0x464   :  { %896 = vmatpush3.bf16.msra.mxu0 %v893_v20 }
 0x465   :  { %898 = vmatprep.subr.bf16.mxu0 %v897_v23 }
 0x468   :  { %900 = vmatpush3.bf16.msra.mxu0 %v897_v23 }
 0x469   :  { %902 = vmatprep.subr.bf16.mxu0 %v901_v28 }
 0x46c   :  { %904 = vmatpush3.bf16.msra.mxu0 %v901_v28 }
 0x52e   :  { %v829_v29 = vpop.f32.mrb[2].mxu0 }
 0x52f   :  { %v573_v30 = vadd.f32 %v829_v29, %v500_v8  ;;  %v567_v31 = vpop.f32.mrb[3].mxu0 }
 0x530   :  { %v568_v32 = vadd.f32 %v567_v31, %v499_v10 }
 0x531   :  { %v577_v34 = vmul.f32 %v992_v25, %v573_v30  ;;  %v599_v25 = vsel %vm249_vm1, %v248_v48, %v587_v38 }
 0x532   :  { %v576_v35 = vmul.f32 %v994_v27, %v568_v32 }
 0x533   :  { %v583_v36 = vadd.f32 %v736_v33, %v577_v34 }
 0x534   :  { %v582_v37 = vadd.f32 %v736_v33, %v576_v35 }
 0x535   :  { %594 = vrot.lane.b32.xlu1 %v583_v36, %s928_s3 }
 0x536   :  { %592 = vrot.lane.b32.xlu0 %v582_v37, %s928_s3 }
 0x5a7   :  { %v595_v40 = vpop.permute.xlu1 %594 }
 0x5a8   :  { %v593_v42 = vpop.permute.xlu0 %592  ;;  %v602_v43 = vsel %vm600_vm2, %v599_v25, %v595_v40 }
 0x5a9   :  { %v601_v27 = vsel %vm600_vm2, %v598_v41, %v593_v42 }
 0x5aa   :  { %850 = vmatprep.mubr.msk.f32.mxu0 %vm607_vm3, %v601_v27 }
 0x5ab   :  { %851 = vmatmul.mubr.msk.f32.vlgmr.msra.gmra.mrb[4].mxu0 %vm607_vm3, %v602_v43 }
 0x67e   :  { %v852_v49 = vpop.f32.mrb[4].mxu0 }
 0x67f   :  { %v686_v50 = vadd.f32 %v852_v49, %v737_v44  ;;  %v680_v51 = vpop.f32.mrb[5].mxu0 }
 0x680   :  { %v681_v46 = vadd.f32 %v737_v44, %v680_v51 }
 0x681   :  { %v693_v47 = vsel %vm689_vm4, %v686_v50, -inf }
 0x682   :  { %694 = vmax.xlane.f32.xlu0 %v693_v47  ;;  %v690_v45 = vsel %vm689_vm4, %v681_v46, -inf }
 0x683   :  { %691 = vmax.xlane.f32.xlu1 %v690_v45 }
 0x70f   :  { %v695_v48 = vpop.xlane.xlu0 %694 }
 0x710   :  { %v697_v52 = vsub.f32 %v686_v50, %v695_v48  ;;  %v692_v53 = vpop.xlane.xlu1 %691 }
 0x711   :  { %v696_v54 = vsub.f32 %v681_v46, %v692_v53 }
 0x712   :  { %v700_v55 = vmul.f32 1.442695, %v697_v52 }
 0x713   :  { %v698_v56 = vmul.f32 1.442695, %v696_v54 }
 0x715   :  { %919 = vpow2.f32 %v698_v56 }
 0x716   :  { %921 = vpow2.f32 %v700_v55 }
 0x71f   :  { %v920_v57 = vpop.eup %919 }
 0x720   :  { %v702_v58 = vsel %vm689_vm4, %v920_v57, 0.0  ;;  %v922_v59 = vpop.eup %921 }
 0x721   :  { %703 = vadd.xlane.f32.xlu1 %v702_v58  ;;  %v705_v60 = vsel %vm689_vm4, %v922_v59, 0.0 }
 0x725   :  { %706 = vadd.xlane.f32.xlu1 %v705_v60 }
 0x7ae   :  { %v704_v61 = vpop.xlane.xlu1 %703 }
 0x7af   :  { %923 = vlog2.f32 %v704_v61 }
 0x7b2   :  { %v707_v62 = vpop.xlane.xlu1 %706 }
 0x7b3   :  { %925 = vlog2.f32 %v707_v62 }
 0x7b9   :  { %v924_v63 = vpop.eup %923 }
 0x7ba   :  { %v709_v0 = vmul.f32 0.6931472, %v924_v63 }
 0x7bc   :  { %v712_v1 = vsub.f32 %v696_v54, %v709_v0 }
 0x7bd   :  { %v926_v2 = vpop.eup %925 }
 0x7be   :  { %714 = vst.msk [vmem:[%s1118_s5] sm:$0xff] %vm689_vm4, %v712_v1  ;;  %v711_v3 = vmul.f32 0.6931472, %v926_v2 }
 0x7c0   :  { %v713_v4 = vsub.f32 %v697_v52, %v711_v3 }
 0x7c2   :  { %715 = vst.msk [vmem:[%s1118_s5 + $0x8] sm:$0xff] %vm689_vm4, %v713_v4 }

</bundles_post_ra>
